<compile_context>
chip_gen: v6e
topology: v6e:2x2x1
jax: 0.10.0
libtpu: 0.0.40
codegen_flags: <defaults>
</compile_context>

<pallas_src>
import functools

import jax
import jax.numpy as jnp
from jax.experimental import pallas as pl
from jax.experimental.pallas import tpu as pltpu

LN_EPS = 1e-5


def block_kernel(x_ref, w12_ref, b12_ref, wp_ref, o_ref, *, hidden_dim):
    # x_ref: (tm, D) token tile (pipelined).
    # w12_ref: (D, 2H) bf16, b12_ref: (1, 2H) f32, wp_ref: (H, D) bf16 (resident).
    x = x_ref[...].astype(jnp.float32)

    # --- LayerNorm statistics in f32 (gamma/beta are folded into w12/b12) ---
    mu = jnp.mean(x, axis=-1, keepdims=True)
    xc = x - mu
    var = jnp.mean(xc * xc, axis=-1, keepdims=True)
    xn = xc * jax.lax.rsqrt(var + LN_EPS)

    # --- fused fc1|fc2 matmul on the MXU (bf16 inputs, f32 accumulation) ---
    h12 = jnp.dot(xn.astype(w12_ref.dtype), w12_ref[...],
                  preferred_element_type=jnp.float32) + b12_ref[...]
    h1 = h12[:, :hidden_dim]
    h2 = h12[:, hidden_dim:]

    # --- SiLU gate; keep the divide on the EUP approximate path ---
    gate = h1 * pl.reciprocal(1.0 + jnp.exp(-h1), approx=True)
    h = (gate * h2).astype(wp_ref.dtype)

    # --- projection back to D ---
    y = jnp.dot(h, wp_ref[...], preferred_element_type=jnp.float32)

    # --- residual: re-read x so the f32 copy is not live across the matmuls ---
    o_ref[...] = (x_ref[...].astype(jnp.float32) + y).astype(o_ref.dtype)


def block_forward(x, gamma, beta, w1, w2, wp, *, tm=256, mxu_dtype=jnp.bfloat16):
    """x: (B, S, D). gamma/beta: (D,). w1/w2: (D, H) (= torch weight.T). wp: (H, D)."""
    B, S, D = x.shape
    H = w1.shape[1]
    N = B * S

    # Fold LayerNorm affine into the fused fc weights:
    #   (xn*g + b) @ W == xn @ (diag(g) @ W) + (b @ W)
    w12 = jnp.concatenate([w1 * gamma[:, None], w2 * gamma[:, None]], axis=1)
    w12 = w12.astype(mxu_dtype)                                        # (D, 2H)
    b12 = jnp.concatenate([beta @ w1, beta @ w2]).reshape(1, 2 * H)
    b12 = b12.astype(jnp.float32)                                      # (1, 2H)
    wp_c = wp.astype(mxu_dtype)                                        # (H, D)

    # Token tiling: large tiles for MXU utilization, multiple of 16 (bf16 sublane
    # packing), padded so the grid divides evenly. Padded rows are harmless
    # (LN of a zero row is finite) and sliced off at the end.
    x2 = x.reshape(N, D)
    n_unit = 16
    n_min = -(-N // n_unit) * n_unit
    tm_eff = min(tm, n_min)
    n_pad = -(-N // tm_eff) * tm_eff
    if n_pad != N:
        x2 = jnp.pad(x2, ((0, n_pad - N), (0, 0)))
    grid = (n_pad // tm_eff,)

    # Cost hint for the XLA scheduler.
    flops = 2 * n_pad * D * (2 * H) + 2 * n_pad * H * D
    w_bytes = ((w12.size + wp_c.size) * jnp.dtype(mxu_dtype).itemsize
               + b12.size * 4)
    bytes_accessed = 2 * n_pad * D * x.dtype.itemsize + w_bytes
    cost = pl.CostEstimate(flops=flops, transcendentals=n_pad * H,
                           bytes_accessed=bytes_accessed)

    # Explicit VMEM budget: single-copy weights + double-buffered x/out tiles
    # + f32 intermediates headroom; clamp to [32 MiB, 64 MiB] (v7x physical).
    act_bytes = 2 * 2 * tm_eff * D * x.dtype.itemsize
    scratch_bytes = 6 * tm_eff * max(2 * H, D) * 4
    vmem_limit = int(min(max(2 * (w_bytes + act_bytes + scratch_bytes), 32 << 20),
                         64 << 20))

    kernel = functools.partial(block_kernel, hidden_dim=H)
    out = pl.pallas_call(
        kernel,
        out_shape=jax.ShapeDtypeStruct((n_pad, D), x.dtype),
        grid_spec=pltpu.PrefetchScalarGridSpec(
            num_scalar_prefetch=0,
            grid=grid,
            in_specs=[
                pl.BlockSpec((tm_eff, D), lambda i: (i, 0)),        # x tiles (pipelined)
                pl.BlockSpec(memory_space=pltpu.MemorySpace.VMEM),  # W12 resident, 1 copy
                pl.BlockSpec(memory_space=pltpu.MemorySpace.VMEM),  # bias row
                pl.BlockSpec(memory_space=pltpu.MemorySpace.VMEM),  # Wp resident, 1 copy
            ],
            out_specs=pl.BlockSpec((tm_eff, D), lambda i: (i, 0)),
        ),
        compiler_params=pltpu.CompilerParams(
            dimension_semantics=("parallel",),
            vmem_limit_bytes=vmem_limit),
        cost_estimate=cost,
    )(x2, w12, b12, wp_c)

    return out[:N].reshape(B, S, D)


def reference_forward(x, gamma, beta, w1, w2, wp):
    mu = jnp.mean(x, axis=-1, keepdims=True)
    var = jnp.mean((x - mu) ** 2, axis=-1, keepdims=True)
    xn = (x - mu) / jnp.sqrt(var + LN_EPS) * gamma + beta
    h1 = xn @ w1
    h2 = xn @ w2
    h = (h1 * jax.nn.sigmoid(h1)) * h2
    return x + h @ wp


if __name__ == "__main__":
    # Small shapes consistent with the module: batch=2, seq=8, in_dim=32, hidden=64
    B, S, D, H = 2, 8, 32, 64
    key = jax.random.PRNGKey(0)
    kx, kg, kb, k1, k2, kp = jax.random.split(key, 6)

    x = jax.random.normal(kx, (B, S, D), dtype=jnp.float32)

    # LayerNorm default gamma=1, beta=0; perturb slightly so they matter.
    gamma = 1.0 + 0.1 * jax.random.normal(kg, (D,), dtype=jnp.float32)
    beta = 0.1 * jax.random.normal(kb, (D,), dtype=jnp.float32)
    # Linear weights stored as (in, out) == PyTorch weight.T
    w1 = 0.1 * jax.random.normal(k1, (D, H), dtype=jnp.float32)
    w2 = 0.1 * jax.random.normal(k2, (D, H), dtype=jnp.float32)
    wp = 0.1 * jax.random.normal(kp, (H, D), dtype=jnp.float32)

    out = block_forward(x, gamma, beta, w1, w2, wp)
    out = jax.block_until_ready(out)

    ref = reference_forward(x, gamma, beta, w1, w2, wp)
    assert out.shape == (B, S, D)
    max_err = float(jnp.max(jnp.abs(out - ref)))
    # bf16 MXU inputs + approx reciprocal -> looser tolerance than pure f32.
    assert jnp.allclose(out, ref, atol=2e-2, rtol=2e-2), (
        f"mismatch vs reference (max abs err {max_err})")

    print("KERNEL_OK")
</pallas_src>

<mosaic_0001>
module attributes {stable_mosaic.version = 11 : i64} {
  func.func @block_kernel(%arg0: i32, %arg1: memref<16x32xf32, #tpu.memory_space<vmem>>, %arg2: memref<32x128xbf16, #tpu.memory_space<vmem>>, %arg3: memref<1x128xf32, #tpu.memory_space<vmem>>, %arg4: memref<64x32xbf16, #tpu.memory_space<vmem>>, %arg5: memref<16x32xf32, #tpu.memory_space<vmem>>) attributes {dimension_semantics = [#tpu.dimension_semantics<parallel>], iteration_bounds = array<i64: 1>, scalar_prefetch = 0 : i64, scratch_operands = 0 : i64, tpu.core_type = #tpu.core_type<tc>, window_params = [{transform_indices = @transform_0, window_bounds = array<i64: 16, 32>}, {pipeline_mode = #tpu.pipeline_mode<synchronous>, transform_indices = @transform_1, window_bounds = array<i64: 32, 128>}, {pipeline_mode = #tpu.pipeline_mode<synchronous>, transform_indices = @transform_2, window_bounds = array<i64: 1, 128>}, {pipeline_mode = #tpu.pipeline_mode<synchronous>, transform_indices = @transform_3, window_bounds = array<i64: 64, 32>}, {transform_indices = @transform_4, window_bounds = array<i64: 16, 32>}]} {
    %c0 = arith.constant 0 : index
    %c0_0 = arith.constant 0 : index
    %0 = vector.load %arg1[%c0, %c0_0] : memref<16x32xf32, #tpu.memory_space<vmem>>, vector<16x32xf32>
    %cst = arith.constant dense<0.000000e+00> : vector<16xf32>
    %1 = vector.multi_reduction <add>, %0, %cst [1] : vector<16x32xf32> to vector<16xf32>
    %2 = vector.shape_cast %1 : vector<16xf32> to vector<16x1xf32>
    %cst_1 = arith.constant 3.200000e+01 : f32
    %3 = vector.broadcast %cst_1 : f32 to vector<16x1xf32>
    %4 = arith.divf %2, %3 : vector<16x1xf32>
    %5 = vector.broadcast %4 : vector<16x1xf32> to vector<16x32xf32>
    %6 = arith.subf %0, %5 : vector<16x32xf32>
    %7 = arith.mulf %6, %6 : vector<16x32xf32>
    %cst_2 = arith.constant dense<0.000000e+00> : vector<16xf32>
    %8 = vector.multi_reduction <add>, %7, %cst_2 [1] : vector<16x32xf32> to vector<16xf32>
    %9 = vector.shape_cast %8 : vector<16xf32> to vector<16x1xf32>
    %cst_3 = arith.constant 3.200000e+01 : f32
    %10 = vector.broadcast %cst_3 : f32 to vector<16x1xf32>
    %11 = arith.divf %9, %10 : vector<16x1xf32>
    %cst_4 = arith.constant 9.99999974E-6 : f32
    %12 = vector.broadcast %cst_4 : f32 to vector<16x1xf32>
    %13 = arith.addf %11, %12 : vector<16x1xf32>
    %14 = math.rsqrt %13 : vector<16x1xf32>
    %15 = vector.broadcast %14 : vector<16x1xf32> to vector<16x32xf32>
    %16 = arith.mulf %6, %15 : vector<16x32xf32>
    %17 = arith.truncf %16 : vector<16x32xf32> to vector<16x32xbf16>
    %c0_5 = arith.constant 0 : index
    %c0_6 = arith.constant 0 : index
    %18 = vector.load %arg2[%c0_5, %c0_6] : memref<32x128xbf16, #tpu.memory_space<vmem>>, vector<32x128xbf16>
    %cst_7 = arith.constant dense<0.000000e+00> : vector<16x128xf32>
    %19 = tpu.matmul %17, %18, %cst_7 {dimension_numbers = #tpu.dot_dimension_numbers<[1], [0], [0], [1], [0, 0, 1, 1], [], []>} : vector<16x32xbf16>, vector<32x128xbf16>, vector<16x128xf32> -> vector<16x128xf32>
    %c0_8 = arith.constant 0 : index
    %c0_9 = arith.constant 0 : index
    %20 = vector.load %arg3[%c0_8, %c0_9] : memref<1x128xf32, #tpu.memory_space<vmem>>, vector<1x128xf32>
    %21 = vector.broadcast %20 : vector<1x128xf32> to vector<16x128xf32>
    %22 = arith.addf %19, %21 : vector<16x128xf32>
    %23 = vector.extract_strided_slice %22 {offsets = [0, 0], sizes = [16, 64], strides = [1, 1]} : vector<16x128xf32> to vector<16x64xf32>
    %24 = vector.extract_strided_slice %22 {offsets = [0, 64], sizes = [16, 64], strides = [1, 1]} : vector<16x128xf32> to vector<16x64xf32>
    %cst_10 = arith.constant 0.000000e+00 : f32
    %25 = vector.broadcast %cst_10 : f32 to vector<16x64xf32>
    %26 = arith.subf %25, %23 : vector<16x64xf32>
    %27 = math.exp %26 : vector<16x64xf32>
    %cst_11 = arith.constant 1.000000e+00 : f32
    %28 = vector.broadcast %cst_11 : f32 to vector<16x64xf32>
    %29 = arith.addf %28, %27 : vector<16x64xf32>
    %30 = tpu.reciprocal %29 {approx = true} : vector<16x64xf32> -> vector<16x64xf32>
    %31 = arith.mulf %23, %30 : vector<16x64xf32>
    %32 = arith.mulf %31, %24 : vector<16x64xf32>
    %33 = arith.truncf %32 : vector<16x64xf32> to vector<16x64xbf16>
    %c0_12 = arith.constant 0 : index
    %c0_13 = arith.constant 0 : index
    %34 = vector.load %arg4[%c0_12, %c0_13] : memref<64x32xbf16, #tpu.memory_space<vmem>>, vector<64x32xbf16>
    %cst_14 = arith.constant dense<0.000000e+00> : vector<16x32xf32>
    %35 = tpu.matmul %33, %34, %cst_14 {dimension_numbers = #tpu.dot_dimension_numbers<[1], [0], [0], [1], [0, 0, 1, 1], [], []>} : vector<16x64xbf16>, vector<64x32xbf16>, vector<16x32xf32> -> vector<16x32xf32>
    %c0_15 = arith.constant 0 : index
    %c0_16 = arith.constant 0 : index
    %36 = vector.load %arg1[%c0_15, %c0_16] : memref<16x32xf32, #tpu.memory_space<vmem>>, vector<16x32xf32>
    %37 = arith.addf %36, %35 : vector<16x32xf32>
    %c0_17 = arith.constant 0 : index
    %c0_18 = arith.constant 0 : index
    %38 = vector.load %arg5[%c0_17, %c0_18] : memref<16x32xf32, #tpu.memory_space<vmem>>, vector<16x32xf32>
    tpu.vector_store %arg5[%c0_17, %c0_18], %37 {strides = array<i32>} : memref<16x32xf32, #tpu.memory_space<vmem>>, vector<16x32xf32>,
    return
  }
  func.func @transform_0(%arg0: i32) -> (i32, i32) {
    %c0_i32 = arith.constant 0 : i32
    %c0_i32_0 = arith.constant 0 : i32
    return %arg0, %c0_i32 : i32, i32
  }
  func.func @transform_1(%arg0: i32) -> (i32, i32) {
    %c0_i32 = arith.constant 0 : i32
    %c0_i32_0 = arith.constant 0 : i32
    %c0_i32_1 = arith.constant 0 : i32
    return %c0_i32, %c0_i32_0 : i32, i32
  }
  func.func @transform_2(%arg0: i32) -> (i32, i32) {
    %c0_i32 = arith.constant 0 : i32
    %c0_i32_0 = arith.constant 0 : i32
    %c0_i32_1 = arith.constant 0 : i32
    return %c0_i32, %c0_i32_0 : i32, i32
  }
  func.func @transform_3(%arg0: i32) -> (i32, i32) {
    %c0_i32 = arith.constant 0 : i32
    %c0_i32_0 = arith.constant 0 : i32
    %c0_i32_1 = arith.constant 0 : i32
    return %c0_i32, %c0_i32_0 : i32, i32
  }
  func.func @transform_4(%arg0: i32) -> (i32, i32) {
    %c0_i32 = arith.constant 0 : i32
    %c0_i32_0 = arith.constant 0 : i32
    return %arg0, %c0_i32 : i32, i32
  }
}

</mosaic_0001>

<bundles_post_ra>
// kernel: tpu_custom_call.1
= control target key start
LH: loop header
LB: loop body
LE: loop exit
PB: predicated region body
PF: predicated region fallthrough
CT: control target
= control target key end

     0   :  { %vm21_vm0 = vcmask 261120   ;;  %s398_s0 = inlined_call_operand.vmem [shape: f32[16,32], index: 0, kind: input, shape index: {}]   ;;  %s399_s1 = inlined_call_operand.vmem [shape: bf16[32,128], index: 1, kind: input, shape index: {}]   ;;  %s400_s2 = inlined_call_operand.vmem [shape: f32[1,128], index: 2, kind: input, shape index: {}]   ;;  %s401_s3 = inlined_call_operand.vmem [shape: bf16[64,32], index: 3, kind: input, shape index: {}]   ;;  %s402_s4 = inlined_call_operand.hbm [shape: f32[16,32], index: 4, kind: output, shape index: {}]  }
   0x1   :  { %v354_v0 = vld [vmem:[%s398_s0] sm:$0xff]  ;;  %v359_v1 = vld [vmem:[%s398_s0 + $0x8] sm:$0xff] }
   0x2   :  { %v22_v2 = vsel %vm21_vm0, %v354_v0, 0.0  ;;  %v25_v3 = vsel %vm21_vm0, %v359_v1, 0.0 }
   0x3   :  { %23 = vadd.xlane.f32.xlu0 %v22_v2 }
   0x4   :  { %9 = vsyncpa [#allocation3], 0  ;;  %v280_v14 = vld [vmem:[%s399_s1 + $0x8] sm:$0xff]   ;;  %v320_v15 = vmov 0.0   ;;  %vm321_vm1 = vmmov 0   ;;  %v281_v16 = vld [vmem:[%s399_s1] sm:$0xff]  }
   0x5   :  { %254 = vmatprep.subr.bf16.mxu0 %v320_v15  ;;  %258 = vmatprep.mubr.msk.bf16.mxu0 %vm321_vm1, %v320_v15  ;;  %v282_v28 = vld [vmem:[%s401_s3 + $0x18] sm:$0xff]   ;;  %v283_v29 = vld [vmem:[%s401_s3 + $0x10] sm:$0xff]   ;;  %v284_v30 = vld [vmem:[%s401_s3 + $0x8] sm:$0xff]   ;;  %s322_s5 = smov 64   ;;  %vm172_vm2 = vcmask 523264  }
   0x6   :  { %255 = vmatpush3.bf16.msra.mxu0 %v280_v14  ;;  %262 = vmatprep.subr.bf16.mxu1 %v320_v15  ;;  %v285_v31 = vld [vmem:[%s401_s3] sm:$0xff]  }
   0x7   :  { %26 = vadd.xlane.f32.xlu0 %v25_v3  ;;  %256 = vmatprep.subr.bf16.mxu0 %v320_v15  ;;  %v237_v32 = vld [vmem:[%s400_s2] ss:$0 sm:$0xff]  ;;  %s323_s2 = smov [#allocation2]  }
   0x8   :  { %270 = vmatprep.mubr.msk.bf16.mxu1 %vm321_vm1, %v320_v15  ;;  %263 = vmatpush3.bf16.msra.mxu1 %v282_v28  ;;  %s226_s3 = sshll.u32 %s323_s2, 4  ;;  %s227_s3 = int_to_ptr.vmem [resolvable:$true] %s226_s3 }
   0x9   :  { %264 = vmatprep.subr.bf16.mxu1 %v320_v15  ;;  %s298_s6 = scalar_lea.vmem %s227_s3, 256  ;;  %p303_p1 = scmp.lt.s32.totalorder %s227_s3, %s227_s3 }
   0xa   :  { %257 = vmatpush3.bf16.msra.mxu0 %v281_v16  ;;  %p299_p0 = scmp.ne.s32.totalorder %s227_s3, %s298_s6  ;;  %p304_p2 = scmp.lt.s32.totalorder %s298_s6, %s298_s6 }
   0xc   :  { %265 = vmatpush3.bf16.msra.mxu1 %v283_v29  ;;  %p305_p3 = por %p304_p2, %p303_p1 }
   0xd   :  { %266 = vmatprep.subr.bf16.mxu1 %v320_v15 }
   0xe   :  { %p306_p4 = pnand %p305_p3, %p299_p0 }
  0x10   :  { %267 = vmatpush3.bf16.msra.mxu1 %v284_v30 }
  0x11   :  { %268 = vmatprep.subr.bf16.mxu1 %v320_v15 }
  0x14   :  { %269 = vmatpush3.bf16.msra.mxu1 %v285_v31 }
  0x8c   :  { %v24_v4 = vpop.xlane.xlu0 %23 }
  0x8d   :  { %v29_v5 = vmul.f32 0.03125, %v24_v4 }
  0x8f   :  { %v31_v6 = vsub.f32 %v354_v0, %v29_v5 }
  0x90   :  { %v27_v7 = vpop.xlane.xlu0 %26 }
  0x91   :  { %v30_v8 = vmul.f32 0.03125, %v27_v7  ;;  %v33_v9 = vmul.f32 %v31_v6, %v31_v6 }
  0x93   :  { %v32_v10 = vsub.f32 %v359_v1, %v30_v8  ;;  %v35_v11 = vsel %vm21_vm0, %v33_v9, 0.0 }
  0x94   :  { %36 = vadd.xlane.f32.xlu1 %v35_v11 }
  0x95   :  { %v34_v12 = vmul.f32 %v32_v10, %v32_v10 }
  0x97   :  { %v38_v13 = vsel %vm21_vm0, %v34_v12, 0.0 }
  0x98   :  { %39 = vadd.xlane.f32.xlu1 %v38_v13 }
 0x11d   :  { %v37_v17 = vpop.xlane.xlu1 %36 }
 0x11e   :  { %v41_v18 = vmul.f32 0.03125, %v37_v17 }
 0x120   :  { %v43_v19 = vadd.f32 1e-05, %v41_v18 }
 0x121   :  { %v40_v20 = vpop.xlane.xlu1 %39 }
 0x122   :  { %v42_v21 = vmul.f32 0.03125, %v40_v20  ;;  %286 = vrsqrt.f32 %v43_v19 }
 0x124   :  { %v44_v22 = vadd.f32 1e-05, %v42_v21 }
 0x126   :  { %288 = vrsqrt.f32 %v44_v22 }
 0x12f   :  { %v287_v23 = vpop.eup %286 }
 0x130   :  { %v47_v25 = vmul.f32 %v287_v23, %v31_v6 }
 0x133   :  { %v289_v24 = vpop.eup %288 }
 0x134   :  { %v48_v26 = vmul.f32 %v289_v24, %v32_v10 }
 0x136   :  { %v49_v27 = vpack.c.bf16 %v48_v26, %v47_v25 }
 0x138   :  { %259 = vmatmul.mubr.msk.bf16.vlgmr.msra.gmra.mxu0 %vm21_vm0, %v49_v27 }
 0x1f8   :  { %v110_v33 = vpop.f32.mrf.mxu0 }
 0x1f9   :  { %v111_v34 = vadd.f32 %v237_v32, %v110_v33 }
 0x1fa   :  { %v260_v35 = vpop.f32.mrf.mxu0 }
 0x1fb   :  { %131 = vrot.lane.b32.xlu0 %v111_v34, %s322_s5  ;;  %v117_v39 = vsub.f32 0.0, %v111_v34 }
 0x1fc   :  { %v113_v36 = vpop.f32.mrf.mxu0 }
 0x1fd   :  { %v114_v37 = vadd.f32 %v237_v32, %v113_v36  ;;  %v119_v41 = vmul.f32 1.442695, %v117_v39 }
 0x1fe   :  { %v261_v38 = vpop.f32.mrf.mxu0 }
 0x1ff   :  { %133 = vrot.lane.b32.xlu1 %v114_v37, %s322_s5  ;;  %v118_v40 = vsub.f32 0.0, %v114_v37  ;;  %290 = vpow2.f32 %v119_v41 }
 0x201   :  { %v121_v42 = vmul.f32 1.442695, %v118_v40 }
 0x203   :  { %292 = vpow2.f32 %v121_v42 }
 0x20c   :  { %v291_v43 = vpop.eup %290 }
 0x20d   :  { %v123_v45 = vadd.f32 1.0, %v291_v43 }
 0x20f   :  { %294 = vrcp.f32 %v123_v45 }
 0x210   :  { %v293_v44 = vpop.eup %292 }
 0x211   :  { %v124_v46 = vadd.f32 1.0, %v293_v44 }
 0x213   :  { %296 = vrcp.f32 %v124_v46 }
 0x21c   :  { %v295_v47 = vpop.eup %294 }
 0x21d   :  { %v127_v50 = vmul.f32 %v295_v47, %v111_v34 }
 0x220   :  { %v297_v48 = vpop.eup %296 }
 0x221   :  { %v128_v51 = vmul.f32 %v297_v48, %v114_v37 }
 0x26d   :  { %v132_v49 = vpop.permute.xlu0 %131 }
 0x26e   :  { %v137_v53 = vmul.f32 %v132_v49, %v127_v50 }
 0x271   :  { %v134_v52 = vpop.permute.xlu1 %133 }
 0x272   :  { %v138_v54 = vmul.f32 %v134_v52, %v128_v51 }
 0x274   :  { %v139_v55 = vpack.c.bf16 %v138_v54, %v137_v53 }
 0x276   :  { %271 = vmatmul.mubr.msk.bf16.vlgmr.msra.gmra.mxu1 %vm172_vm2, %v139_v55 }
 0x336   :  { %v210_v56 = vpop.f32.mrf.mxu1 }
 0x337   :  { %v217_v57 = vadd.f32 %v210_v56, %v354_v0 }
 0x338   :  { %v272_v58 = vpop.f32.mrf.mxu1 }
 0x339   :  { %219 = vst.msk [vmem:[#allocation2] sm:$0xff] %vm21_vm0, %v217_v57 }
 0x33a   :  { %v213_v59 = vpop.f32.mrf.mxu1 }
 0x33b   :  { %v218_v60 = vadd.f32 %v213_v59, %v359_v1 }
 0x33c   :  { %v273_v61 = vpop.f32.mrf.mxu1 }
 0x33d   :  { %220 = vst.msk [vmem:[#allocation2 + $0x8] sm:$0xff] %vm21_vm0, %v218_v60 }
 0x33e   :  { %309 = shalt.err (!%p306_p4)
}
 0x33f   :  { %s324_s7 = smov 128   ;;  %s325_s8 = smov 8  }
 0x340   :  { %232 = dma.vmem_to_hbm [thread:$0]  %s227_s3, 256, %s402_s4, [#allocation3], %s324_s7, %s324_s7, %s325_s8  }
 0x341   :  { %318 = dma.done.wait [#allocation3], 256  }
 0x342   :  { %319 = vsyncadd [#allocation3], 4294967040 }
 0x343   :  { %236 = vsyncpa [#allocation3], 1 }

</bundles_post_ra>
